<compile_context>
chip_gen: v5e
topology: v5e:2x2
jax: 0.10.0
libtpu: 0.0.40
codegen_flags: <defaults>
</compile_context>

<pallas_src>
import functools

import jax
import jax.numpy as jnp
from jax.experimental import pallas as pl
from jax.experimental.pallas import tpu as pltpu

IN_DIM = 28 * 28        # 784
HID = 64                # logical hidden size (PyTorch module)
HID_PAD = 128           # padded hidden size -> full lane width / MXU tile
OUT_DIM = 10
MAX_BATCH_TILE = 2048   # 2048x784 f32 x-tile ~6.3 MB; x2 pipeline buffers ~12.6 MB


def _default_elem_dtype():
    """bf16 elementwise (bias+ReLU) on chips with a bf16 VPU (v6e/v7x);
    f32 on v5e and older (no bf16 VALU there)."""
    try:
        kind = jax.devices()[0].device_kind.lower()
    except Exception:
        return jnp.float32
    if any(v in kind for v in ("v2", "v3", "v4", "v5")):
        return jnp.float32
    return jnp.bfloat16


_ELEM_DTYPE = _default_elem_dtype()


def mlp_kernel(x_ref, w1_ref, b1_ref, w2_ref, b2_ref, w3_ref, b3_ref,
               w4_ref, b4_ref, out_ref, *, elem_dtype):
    # Cast the x tile to bf16 in VMEM (cheap VPU work, overlapped with the
    # pipeline) instead of a separate wrapper-side f32->bf16 HBM pass.
    h = x_ref[...].astype(jnp.bfloat16)

    def hidden(h_bf16, w_ref, b_ref):
        acc = jnp.dot(h_bf16, w_ref[...], preferred_element_type=jnp.float32)
        a = jnp.maximum(acc.astype(elem_dtype) + b_ref[...].astype(elem_dtype), 0)
        return a.astype(jnp.bfloat16)

    h = hidden(h, w1_ref, b1_ref)      # fc1 + relu
    h = hidden(h, w2_ref, b2_ref)      # fc2 + relu
    h = hidden(h, w3_ref, b3_ref)      # fc3 + relu
    logits = jnp.dot(h, w4_ref[...], preferred_element_type=jnp.float32)
    logits = logits + b4_ref[...]      # fc4 (f32), only the 10 real classes

    # Numerically stable row-wise log_softmax (exp/log run on the EUP slot).
    # Left un-restructured on purpose: on this HBM-bound path the only real
    # lever is amortizing it over a bigger batch tile.
    m = jnp.max(logits, axis=1, keepdims=True)
    shifted = logits - m
    lse = jnp.log(jnp.sum(jnp.exp(shifted), axis=1, keepdims=True))
    out_ref[...] = shifted - lse


def _pad2d(a, shape):
    out = jnp.zeros(shape, a.dtype)
    return out.at[:a.shape[0], :a.shape[1]].set(a)


def prepare_params(params):
    """Zero-pad hidden dim 64->128 (math-preserving) and cast weights to bf16.
    Biases stay f32 (cast to the elementwise dtype inside the kernel)."""
    w1, b1, w2, b2, w3, b3, w4, b4 = params
    w1p = _pad2d(w1, (IN_DIM, HID_PAD)).astype(jnp.bfloat16)
    b1p = _pad2d(b1, (1, HID_PAD))
    w2p = _pad2d(w2, (HID_PAD, HID_PAD)).astype(jnp.bfloat16)
    b2p = _pad2d(b2, (1, HID_PAD))
    w3p = _pad2d(w3, (HID_PAD, HID_PAD)).astype(jnp.bfloat16)
    b3p = _pad2d(b3, (1, HID_PAD))
    w4p = _pad2d(w4, (HID_PAD, OUT_DIM)).astype(jnp.bfloat16)
    b4p = b4
    return (w1p, b1p, w2p, b2p, w3p, b3p, w4p, b4p)


def _round_up(a, m):
    return ((a + m - 1) // m) * m


@jax.jit
def net_forward(x, padded_params):
    """x: (B, 784) float (f32 or bf16).  Returns (B, 10) f32 log-probabilities."""
    w1, b1, w2, b2, w3, b3, w4, b4 = padded_params
    B = x.shape[0]

    # Batch tile: large enough to amortize the ~0.35us per-grid-step overhead,
    # small enough that the grid has >= 2 steps whenever B allows (both v7x
    # TensorCores get work), and never larger than the batch itself (so a block
    # never exceeds the array; a non-8-aligned B becomes one full-extent block).
    tile = min(MAX_BATCH_TILE, _round_up(pl.cdiv(B, 2), 8))
    if tile >= B:
        tile = B
    grid = (pl.cdiv(B, tile),)

    def const_spec(shape):
        # Constant block index -> Pallas keeps these resident in VMEM across steps.
        return pl.BlockSpec(shape, lambda i: (0, 0))

    flops = 2 * B * (IN_DIM * HID_PAD + 2 * HID_PAD * HID_PAD + HID_PAD * OUT_DIM)
    bytes_accessed = (
        B * IN_DIM * x.dtype.itemsize                                         # x
        + (IN_DIM * HID_PAD + 2 * HID_PAD * HID_PAD + HID_PAD * OUT_DIM) * 2  # weights (bf16)
        + (3 * HID_PAD + OUT_DIM) * 4                                         # biases (f32)
        + B * OUT_DIM * 4                                                     # output (f32)
    )
    cost = pl.CostEstimate(flops=flops,
                           transcendentals=B * (OUT_DIM + 1),
                           bytes_accessed=bytes_accessed)

    out = pl.pallas_call(
        functools.partial(mlp_kernel, elem_dtype=_ELEM_DTYPE),
        out_shape=jax.ShapeDtypeStruct((B, OUT_DIM), jnp.float32),
        grid_spec=pltpu.PrefetchScalarGridSpec(
            num_scalar_prefetch=0,
            grid=grid,
            in_specs=[
                pl.BlockSpec((tile, IN_DIM), lambda i: (i, 0)),   # x tile
                const_spec(w1.shape), const_spec(b1.shape),
                const_spec(w2.shape), const_spec(b2.shape),
                const_spec(w3.shape), const_spec(b3.shape),
                const_spec(w4.shape), const_spec(b4.shape),
            ],
            out_specs=pl.BlockSpec((tile, OUT_DIM), lambda i: (i, 0)),
        ),
        compiler_params=pltpu.CompilerParams(
            dimension_semantics=("parallel",),
            # v5e's default scoped VMEM is 16 MiB; a 2048-row f32 x tile
            # double-buffered needs more. 32 MiB is the default on v6e/v7x.
            vmem_limit_bytes=32 * 1024 * 1024,
        ),
        cost_estimate=cost,
    )(x, w1, b1, w2, b2, w3, b3, w4, b4)
    return out


def init_params(key):
    """Deterministic init mimicking torch.nn.Linear default
    (U[-1/sqrt(fan_in), 1/sqrt(fan_in)])."""
    dims = [(IN_DIM, HID), (HID, HID), (HID, HID), (HID, OUT_DIM)]
    params = []
    for (fan_in, fan_out) in dims:
        key, kw, kb = jax.random.split(key, 3)
        bound = 1.0 / jnp.sqrt(fan_in)
        w = jax.random.uniform(kw, (fan_in, fan_out), jnp.float32, -bound, bound)
        b = jax.random.uniform(kb, (1, fan_out), jnp.float32, -bound, bound)
        params += [w, b]
    return tuple(params)


def reference_forward(x, params):
    """Pure-f32 JAX reference (matches the PyTorch module semantics)."""
    w1, b1, w2, b2, w3, b3, w4, b4 = params
    h = jax.nn.relu(x @ w1 + b1)
    h = jax.nn.relu(h @ w2 + b2)
    h = jax.nn.relu(h @ w3 + b3)
    logits = h @ w4 + b4
    return jax.nn.log_softmax(logits, axis=1)


def reference_forward_bf16(x, params):
    """Precision-matched reference: bf16 matmul inputs, f32 MXU accumulation,
    elementwise in the same dtype the kernel uses, f32 log_softmax."""
    w1, b1, w2, b2, w3, b3, w4, b4 = params
    ed = _ELEM_DTYPE
    h = x.astype(jnp.bfloat16)
    for w, b in ((w1, b1), (w2, b2), (w3, b3)):
        acc = jnp.dot(h, w.astype(jnp.bfloat16), preferred_element_type=jnp.float32)
        h = jnp.maximum(acc.astype(ed) + b.astype(ed), 0).astype(jnp.bfloat16)
    logits = jnp.dot(h, w4.astype(jnp.bfloat16),
                     preferred_element_type=jnp.float32) + b4
    return jax.nn.log_softmax(logits, axis=1)


if __name__ == "__main__":
    key = jax.random.PRNGKey(0)
    kx, kp = jax.random.split(key)
    params = init_params(kp)
    padded_params = prepare_params(params)

    # B=16: even grid (tile=8, 2 steps).  B=50: ragged last block (tile=32,
    # grid=2, 14 out-of-bounds rows read and dropped on write) — exercises the
    # no-jnp.pad path end to end.
    for B in (16, 50):
        kx, k = jax.random.split(kx)
        x = jax.random.normal(k, (B, IN_DIM), jnp.float32)
        out = jax.block_until_ready(net_forward(x, padded_params))
        assert out.shape == (B, OUT_DIM)
        ref_bf16 = reference_forward_bf16(x, params)
        ref_f32 = reference_forward(x, params)
        assert jnp.allclose(out, ref_bf16, atol=2e-2, rtol=0.0), \
            f"mismatch vs precision-matched bf16 reference (B={B})"
        assert jnp.allclose(out, ref_f32, atol=5e-2, rtol=0.0), \
            f"mismatch vs f32 reference (B={B})"

    print("KERNEL_OK")
</pallas_src>

<mosaic_0001>
module attributes {stable_mosaic.version = 11 : i64} {
  func.func @mlp_kernel(%arg0: i32, %arg1: memref<8x784xf32, #tpu.memory_space<vmem>>, %arg2: memref<784x128xbf16, #tpu.memory_space<vmem>>, %arg3: memref<1x128xf32, #tpu.memory_space<vmem>>, %arg4: memref<128x128xbf16, #tpu.memory_space<vmem>>, %arg5: memref<1x128xf32, #tpu.memory_space<vmem>>, %arg6: memref<128x128xbf16, #tpu.memory_space<vmem>>, %arg7: memref<1x128xf32, #tpu.memory_space<vmem>>, %arg8: memref<128x10xbf16, #tpu.memory_space<vmem>>, %arg9: memref<1x10xf32, #tpu.memory_space<vmem>>, %arg10: memref<8x10xf32, #tpu.memory_space<vmem>>) attributes {dimension_semantics = [#tpu.dimension_semantics<parallel>], iteration_bounds = array<i64: 2>, scalar_prefetch = 0 : i64, scratch_operands = 0 : i64, tpu.core_type = #tpu.core_type<tc>, window_params = [{transform_indices = @transform_0, window_bounds = array<i64: 8, 784>}, {pipeline_mode = #tpu.pipeline_mode<synchronous>, transform_indices = @transform_1, window_bounds = array<i64: 784, 128>}, {pipeline_mode = #tpu.pipeline_mode<synchronous>, transform_indices = @transform_2, window_bounds = array<i64: 1, 128>}, {pipeline_mode = #tpu.pipeline_mode<synchronous>, transform_indices = @transform_3, window_bounds = array<i64: 128, 128>}, {pipeline_mode = #tpu.pipeline_mode<synchronous>, transform_indices = @transform_4, window_bounds = array<i64: 1, 128>}, {pipeline_mode = #tpu.pipeline_mode<synchronous>, transform_indices = @transform_5, window_bounds = array<i64: 128, 128>}, {pipeline_mode = #tpu.pipeline_mode<synchronous>, transform_indices = @transform_6, window_bounds = array<i64: 1, 128>}, {pipeline_mode = #tpu.pipeline_mode<synchronous>, transform_indices = @transform_7, window_bounds = array<i64: 128, 10>}, {pipeline_mode = #tpu.pipeline_mode<synchronous>, transform_indices = @transform_8, window_bounds = array<i64: 1, 10>}, {transform_indices = @transform_9, window_bounds = array<i64: 8, 10>}]} {
    %c0 = arith.constant 0 : index
    %c0_0 = arith.constant 0 : index
    %0 = vector.load %arg1[%c0, %c0_0] : memref<8x784xf32, #tpu.memory_space<vmem>>, vector<8x784xf32>
    %1 = arith.truncf %0 : vector<8x784xf32> to vector<8x784xbf16>
    %c0_1 = arith.constant 0 : index
    %c0_2 = arith.constant 0 : index
    %2 = vector.load %arg2[%c0_1, %c0_2] : memref<784x128xbf16, #tpu.memory_space<vmem>>, vector<784x128xbf16>
    %cst = arith.constant dense<0.000000e+00> : vector<8x128xf32>
    %3 = tpu.matmul %1, %2, %cst {dimension_numbers = #tpu.dot_dimension_numbers<[1], [0], [0], [1], [0, 0, 1, 1], [], []>} : vector<8x784xbf16>, vector<784x128xbf16>, vector<8x128xf32> -> vector<8x128xf32>
    %4 = arith.truncf %3 : vector<8x128xf32> to vector<8x128xbf16>
    %c0_3 = arith.constant 0 : index
    %c0_4 = arith.constant 0 : index
    %5 = vector.load %arg3[%c0_3, %c0_4] : memref<1x128xf32, #tpu.memory_space<vmem>>, vector<1x128xf32>
    %6 = arith.truncf %5 : vector<1x128xf32> to vector<1x128xbf16>
    %7 = vector.broadcast %6 : vector<1x128xbf16> to vector<8x128xbf16>
    %8 = arith.addf %4, %7 : vector<8x128xbf16>
    %cst_5 = arith.constant 0.000000e+00 : bf16
    %9 = vector.broadcast %cst_5 : bf16 to vector<8x128xbf16>
    %10 = arith.maximumf %8, %9 : vector<8x128xbf16>
    %c0_6 = arith.constant 0 : index
    %c0_7 = arith.constant 0 : index
    %11 = vector.load %arg4[%c0_6, %c0_7] : memref<128x128xbf16, #tpu.memory_space<vmem>>, vector<128x128xbf16>
    %cst_8 = arith.constant dense<0.000000e+00> : vector<8x128xf32>
    %12 = tpu.matmul %10, %11, %cst_8 {dimension_numbers = #tpu.dot_dimension_numbers<[1], [0], [0], [1], [0, 0, 1, 1], [], []>} : vector<8x128xbf16>, vector<128x128xbf16>, vector<8x128xf32> -> vector<8x128xf32>
    %13 = arith.truncf %12 : vector<8x128xf32> to vector<8x128xbf16>
    %c0_9 = arith.constant 0 : index
    %c0_10 = arith.constant 0 : index
    %14 = vector.load %arg5[%c0_9, %c0_10] : memref<1x128xf32, #tpu.memory_space<vmem>>, vector<1x128xf32>
    %15 = arith.truncf %14 : vector<1x128xf32> to vector<1x128xbf16>
    %16 = vector.broadcast %15 : vector<1x128xbf16> to vector<8x128xbf16>
    %17 = arith.addf %13, %16 : vector<8x128xbf16>
    %cst_11 = arith.constant 0.000000e+00 : bf16
    %18 = vector.broadcast %cst_11 : bf16 to vector<8x128xbf16>
    %19 = arith.maximumf %17, %18 : vector<8x128xbf16>
    %c0_12 = arith.constant 0 : index
    %c0_13 = arith.constant 0 : index
    %20 = vector.load %arg6[%c0_12, %c0_13] : memref<128x128xbf16, #tpu.memory_space<vmem>>, vector<128x128xbf16>
    %cst_14 = arith.constant dense<0.000000e+00> : vector<8x128xf32>
    %21 = tpu.matmul %19, %20, %cst_14 {dimension_numbers = #tpu.dot_dimension_numbers<[1], [0], [0], [1], [0, 0, 1, 1], [], []>} : vector<8x128xbf16>, vector<128x128xbf16>, vector<8x128xf32> -> vector<8x128xf32>
    %22 = arith.truncf %21 : vector<8x128xf32> to vector<8x128xbf16>
    %c0_15 = arith.constant 0 : index
    %c0_16 = arith.constant 0 : index
    %23 = vector.load %arg7[%c0_15, %c0_16] : memref<1x128xf32, #tpu.memory_space<vmem>>, vector<1x128xf32>
    %24 = arith.truncf %23 : vector<1x128xf32> to vector<1x128xbf16>
    %25 = vector.broadcast %24 : vector<1x128xbf16> to vector<8x128xbf16>
    %26 = arith.addf %22, %25 : vector<8x128xbf16>
    %cst_17 = arith.constant 0.000000e+00 : bf16
    %27 = vector.broadcast %cst_17 : bf16 to vector<8x128xbf16>
    %28 = arith.maximumf %26, %27 : vector<8x128xbf16>
    %c0_18 = arith.constant 0 : index
    %c0_19 = arith.constant 0 : index
    %29 = vector.load %arg8[%c0_18, %c0_19] : memref<128x10xbf16, #tpu.memory_space<vmem>>, vector<128x10xbf16>
    %cst_20 = arith.constant dense<0.000000e+00> : vector<8x10xf32>
    %30 = tpu.matmul %28, %29, %cst_20 {dimension_numbers = #tpu.dot_dimension_numbers<[1], [0], [0], [1], [0, 0, 1, 1], [], []>} : vector<8x128xbf16>, vector<128x10xbf16>, vector<8x10xf32> -> vector<8x10xf32>
    %c0_21 = arith.constant 0 : index
    %c0_22 = arith.constant 0 : index
    %31 = vector.load %arg9[%c0_21, %c0_22] : memref<1x10xf32, #tpu.memory_space<vmem>>, vector<1x10xf32>
    %32 = vector.broadcast %31 : vector<1x10xf32> to vector<8x10xf32>
    %33 = arith.addf %30, %32 : vector<8x10xf32>
    %cst_23 = arith.constant dense<0xFF800000> : vector<8xf32>
    %34 = vector.multi_reduction <maximumf>, %33, %cst_23 [1] : vector<8x10xf32> to vector<8xf32>
    %35 = vector.shape_cast %34 : vector<8xf32> to vector<8x1xf32>
    %36 = vector.broadcast %35 : vector<8x1xf32> to vector<8x10xf32>
    %37 = arith.subf %33, %36 : vector<8x10xf32>
    %38 = math.exp %37 : vector<8x10xf32>
    %cst_24 = arith.constant dense<0.000000e+00> : vector<8xf32>
    %39 = vector.multi_reduction <add>, %38, %cst_24 [1] : vector<8x10xf32> to vector<8xf32>
    %40 = vector.shape_cast %39 : vector<8xf32> to vector<8x1xf32>
    %41 = math.log %40 : vector<8x1xf32>
    %42 = vector.broadcast %41 : vector<8x1xf32> to vector<8x10xf32>
    %43 = arith.subf %37, %42 : vector<8x10xf32>
    %c0_25 = arith.constant 0 : index
    %c0_26 = arith.constant 0 : index
    %44 = vector.load %arg10[%c0_25, %c0_26] : memref<8x10xf32, #tpu.memory_space<vmem>>, vector<8x10xf32>
    tpu.vector_store %arg10[%c0_25, %c0_26], %43 {strides = array<i32>} : memref<8x10xf32, #tpu.memory_space<vmem>>, vector<8x10xf32>,
    return
  }
  func.func @transform_0(%arg0: i32) -> (i32, i32) {
    %c0_i32 = arith.constant 0 : i32
    %c0_i32_0 = arith.constant 0 : i32
    return %arg0, %c0_i32 : i32, i32
  }
  func.func @transform_1(%arg0: i32) -> (i32, i32) {
    %c0_i32 = arith.constant 0 : i32
    %c0_i32_0 = arith.constant 0 : i32
    %c0_i32_1 = arith.constant 0 : i32
    return %c0_i32, %c0_i32_0 : i32, i32
  }
  func.func @transform_2(%arg0: i32) -> (i32, i32) {
    %c0_i32 = arith.constant 0 : i32
    %c0_i32_0 = arith.constant 0 : i32
    %c0_i32_1 = arith.constant 0 : i32
    return %c0_i32, %c0_i32_0 : i32, i32
  }
  func.func @transform_3(%arg0: i32) -> (i32, i32) {
    %c0_i32 = arith.constant 0 : i32
    %c0_i32_0 = arith.constant 0 : i32
    %c0_i32_1 = arith.constant 0 : i32
    return %c0_i32, %c0_i32_0 : i32, i32
  }
  func.func @transform_4(%arg0: i32) -> (i32, i32) {
    %c0_i32 = arith.constant 0 : i32
    %c0_i32_0 = arith.constant 0 : i32
    %c0_i32_1 = arith.constant 0 : i32
    return %c0_i32, %c0_i32_0 : i32, i32
  }
  func.func @transform_5(%arg0: i32) -> (i32, i32) {
    %c0_i32 = arith.constant 0 : i32
    %c0_i32_0 = arith.constant 0 : i32
    %c0_i32_1 = arith.constant 0 : i32
    return %c0_i32, %c0_i32_0 : i32, i32
  }
  func.func @transform_6(%arg0: i32) -> (i32, i32) {
    %c0_i32 = arith.constant 0 : i32
    %c0_i32_0 = arith.constant 0 : i32
    %c0_i32_1 = arith.constant 0 : i32
    return %c0_i32, %c0_i32_0 : i32, i32
  }
  func.func @transform_7(%arg0: i32) -> (i32, i32) {
    %c0_i32 = arith.constant 0 : i32
    %c0_i32_0 = arith.constant 0 : i32
    %c0_i32_1 = arith.constant 0 : i32
    return %c0_i32, %c0_i32_0 : i32, i32
  }
  func.func @transform_8(%arg0: i32) -> (i32, i32) {
    %c0_i32 = arith.constant 0 : i32
    %c0_i32_0 = arith.constant 0 : i32
    %c0_i32_1 = arith.constant 0 : i32
    return %c0_i32, %c0_i32_0 : i32, i32
  }
  func.func @transform_9(%arg0: i32) -> (i32, i32) {
    %c0_i32 = arith.constant 0 : i32
    %c0_i32_0 = arith.constant 0 : i32
    return %arg0, %c0_i32 : i32, i32
  }
}

</mosaic_0001>

<bundles_post_ra>
// kernel: net_forward.1
= control target key start
LH: loop header
LB: loop body
LE: loop exit
PB: predicated region body
PF: predicated region fallthrough
CT: control target
= control target key end

     0   :  { %s2167_s0 = inlined_call_operand.hbm [shape: f32[16,784], index: 0, kind: input, shape index: {}]   ;;  %s2168_s1 = inlined_call_operand.hbm [shape: bf16[784,128], index: 1, kind: input, shape index: {}]   ;;  %s2169_s2 = inlined_call_operand.vmem [shape: f32[1,128], index: 2, kind: input, shape index: {}]   ;;  %s2170_s3 = inlined_call_operand.vmem [shape: bf16[128,128], index: 3, kind: input, shape index: {}]   ;;  %s2171_s4 = inlined_call_operand.vmem [shape: f32[1,128], index: 4, kind: input, shape index: {}]   ;;  %s2172_s5 = inlined_call_operand.hbm [shape: bf16[128,128], index: 5, kind: input, shape index: {}]   ;;  %s2173_s6 = inlined_call_operand.vmem [shape: f32[1,128], index: 6, kind: input, shape index: {}]   ;;  %s2174_s7 = inlined_call_operand.vmem [shape: bf16[128,10], index: 7, kind: input, shape index: {}]   ;;  %s2175_s8 = inlined_call_operand.vmem [shape: f32[1,10], index: 8, kind: input, shape index: {}]   ;;  %s2176_s9 = inlined_call_operand.hbm [shape: f32[16,10], index: 9, kind: output, shape index: {}]  }
   0x1   :  { %2180 = sst [smem:[#allocation15_spill]] %s2168_s1 }
   0x2   :  { %2181 = sst [smem:[#allocation16_spill]] %s2172_s5 }
   0x3   :  { %14 = vsyncpa [#allocation3], 0 }
   0x4   :  { %16 = vsyncpa [#allocation3 + $0x1], 0 }
   0x5   :  { %17 = vsyncpa [#allocation6], 0 }
   0x6   :  { %18 = vsyncpa [#allocation4], 0 }
   0x7   :  { %20 = vsyncpa [#allocation4 + $0x1], 0  ;;  %s1955_s30 = smov 0   ;;  %s1957_s10 = smov 0  }
   0x8   :  { %s1959_s11 = smov 0   ;;  %s1961_s12 = smov 0  }
   0x9 LB: > { %2182 = sst [smem:[#allocation12_spill]] %s1895_s11  ;;  %s1979_s16 = sadd.s32 4294967295, %s1899_s12   ;;  %s1899_s12 = sphi %s1961_s12, %s2193_s12   ;;  %s1895_s11 = sphi %s1959_s11, %s2195_s11   ;;  %s1891_s10 = sphi %s1957_s10, %s2197_s10   ;;  %s1887_s30 = sphi %s1955_s30, %s2196_s30  }
   0xa   : > { %s2183_s1 = sld [smem:[#allocation15_spill]]  ;;  %p1283_p0 = scmp.ge.s32.totalorder %s1899_s12, 1 }
   0xb   : > { %p47_p1 = scmp.eq.s32.totalorder %s1979_s16, 0  ;;  %p251_p2 = scmp.lt.s32.totalorder %s1899_s12, 3 }
   0xc   : > { %s1901_s18 = smov [#allocation5]   ;;  %s2185_s5 = sld [smem:[#allocation16_spill]] }
   0xd   : > { %p1984_p3 = pnand %p1283_p0, %p251_p2  ;;  %s264_s19 = sshll.u32 %s1901_s18, 4  ;;  %s265_s19 = int_to_ptr.vmem [resolvable:$true] %s264_s19 }
   0xe   : > { %s1902_s23 = smov [#allocation7]   ;;  %s1903_s25 = smov 64  }
   0xf   : > { %p1677_p4 = pneg %p1984_p3  ;;  %s287_s24 = sshll.u32 %s1902_s23, 4  ;;  %s288_s24 = int_to_ptr.vmem [resolvable:$true] %s287_s24 }
  0x10   : > { %s262_s15 = sshll.u32 %s2183_s1, 4  ;;  %s1904_s26 = smov 4   ;;  %s263_s15 = int_to_ptr.hbm [resolvable:$true] %s262_s15 }
  0x11   : > { %p1678_p6 = pnand %p1677_p4, %p47_p1  ;;  %s1282_s27 = sadd.s32 4294967294, %s1899_s12  }
  0x12   : > { %s285_s22 = sshll.u32 %s2185_s5, 4  ;;  %s1998_s28 = sadd.s32 1, %s1899_s12   ;;  %s286_s22 = int_to_ptr.hbm [resolvable:$true] %s285_s22 }
  0x13   : > { %1680 = dma.hbm_to_vmem [thread:$0]  (!%p1678_p6), %s263_s15, 6272, %s265_s19, [#allocation6], %s1903_s25, %s1903_s25, %s1904_s26  }
  0x14   : > { %1683 = dma.hbm_to_vmem [thread:$0]  (!%p1678_p6), %s286_s22, 1024, %s288_s24, [#allocation6], %s1903_s25, %s1903_s25, %s1904_s26  }
  0x15   : > { %2186 = sst [smem:[#allocation13_spill]] %s1998_s28  ;;  %s30_s29 = ssub.s32 %s1899_s12, %s1998_s28 }
  0x16   : > { %s33_s13 = sadd.s32 1, %s1895_s11  ;;  %p31_p7 = scmp.eq.s32.totalorder %s30_s29, 0 }
  0x17   : > { %p40_p8 = scmp.ne.s32.totalorder %s1895_s11, %s1891_s10  ;;  %p41_p9 = scmp.eq.s32.totalorder %s1899_s12, 0 }
  0x18   : > { %p46_p10 = scmp.ne.s32.totalorder %s1891_s10, %s1887_s30  ;;  %p238_p13 = scmp.eq.s32.totalorder %s1979_s16, 1 }
  0x19   : > { %s2009_s14 = scalar_select %p31_p7, %s1895_s11, %s33_s13  }
  0x1a   : > { %p42_p11 = por %p41_p9, %p40_p8  ;;  %p2013_p12 = por %p47_p1, %p46_p10 }
  0x1b   : > { %2187 = sst [smem:[#allocation14_spill]] %s2009_s14  ;;  %p244_p0 = scmp.eq.s32.totalorder %s1282_s27, 1 }
  0x1c   : > { %p1694_p2 = scmp.lt.s32.totalorder %s1899_s12, 2  ;;  %s310_s18 = sand.u32 1, %s1895_s11  }
  0x1d   : > { %p2020_p4 = por %p238_p13, %p40_p8  ;;  %p2024_p6 = por %p244_p0, %p46_p10 }
  0x1e   : > { %s1662_s21 = smul.u32 56, %s310_s18  ;;  %p2029_p7 = pnand %p1694_p2, %p42_p11 }
  0x1f   : > { %s1663_s22 = smul.u32 56, %s1899_s12  ;;  %s311_s1 = scalar_lea.sflag [#allocation3], %s310_s18 }
  0x20   : > { %s314_s27 = scalar_lea.vmem [#allocation2], %s1662_s21  ;;  %p1803_p9 = pneg %p2029_p7 }
  0x21   : > { %s319_s26 = scalar_lea.hbm %s2167_s0, %s1663_s22  ;;  %s323_s29 = sshll.u32 %s314_s27, 4  ;;  %s324_s29 = int_to_ptr.vmem [resolvable:$true] %s323_s29 }
  0x22   : > { %s321_s13 = sshll.u32 %s319_s26, 4  ;;  %s1806_s24 = scalar_lea.hbm %s2167_s0, 112  ;;  %s322_s13 = int_to_ptr.hbm [resolvable:$true] %s321_s13 }
  0x23   : > { %s1799_s5 = sshra.s32 %s322_s13, 4  ;;  %s1800_s5 = int_to_ptr.hbm [resolvable:$true] %s1799_s5 }
  0x24   : > { %s1801_s14 = scalar_lea.hbm %s1800_s5, 56  ;;  %p1807_p13 = scmp.lt.s32.totalorder %s1800_s5, %s2167_s0 }
  0x25   : > { %p1802_p8 = scmp.ne.s32.totalorder %s1800_s5, %s1801_s14  ;;  %p1808_p0 = scmp.lt.s32.totalorder %s1806_s24, %s1801_s14 }
  0x27   : > { %p1804_p10 = pnand %p1803_p9, %p1802_p8  ;;  %p1809_p2 = por %p1808_p0, %p1807_p13 }
  0x29   : > { %p1805_p11 = pneg %p1804_p10 }
  0x2b   : > { %p1810_p5 = pnand %p1809_p2, %p1805_p11 }
  0x2d   : > { %1813 = shalt.err (!%p1810_p5)
}
  0x2e   : > { %1687 = dma.hbm_to_vmem [thread:$0]  (!%p2029_p7), %s322_s13, 896, %s324_s29, %s311_s1  }
  0x2f   : > { %332 = sbr.rel (%p1984_p3) target bundleno = 932 (0x3a4), region = 56  ;;  %s2049_s18 = sand.u32 (!%p1984_p3), 1, %s1891_s10  }
  0x30   : > { %s1664_s11 = smul.u32 (!%p1984_p3), 56, %s2049_s18  ;;  %s335_s28 = scalar_lea.sflag (!%p1984_p3), [#allocation3], %s2049_s18 }
  0x32   : > { %s2053_s21 = scalar_lea.vmem (!%p1984_p3), [#allocation2], %s1664_s11 }
  0x34   : > { %1874 = dma.done.wait (%p2013_p12), %s335_s28, 896  }
  0x35   : > { %1876 = vsyncadd (%p2013_p12), %s335_s28, 4294966400 }
  0x36   : > { %1878 = dma.done.wait (%p47_p1), [#allocation6], 7296  }
  0x37   : > { %1880 = vsyncadd (%p47_p1), [#allocation6], 4294960000  ;;  %v1596_v0 = vld [vmem:[#allocation5 + $0x38] sm:$0xff]  ;;  %v1595_v3 = vld [vmem:[#allocation5 + $0x30] sm:$0xff]  ;;  %vm791_vm0 = vcmask 130048   ;;  %vm1163_vm1 = vcmask 80896  }
  0x38   : > { %v1604_v1 = vld [vmem:[#allocation5 + $0x78] sm:$0xff]  ;;  %795 = vmatpush.bf16.msra.mxu0 %v1596_v0  ;;  %v1603_v4 = vld [vmem:[#allocation5 + $0x70] sm:$0xff]  ;;  %v1594_v8 = vld [vmem:[#allocation5 + $0x28] sm:$0xff]  ;;  %s1291_s29 = sshll.u32 %s2049_s18, 3  ;;  %s1586_s13 = sshll.u32 %s1979_s16, 3 }
  0x39   : > { %v1612_v2 = vld [vmem:[#allocation5 + $0xb8] sm:$0xff]  ;;  %808 = vmatpush.bf16.msra.mxu1 %v1604_v1  ;;  %v1611_v5 = vld [vmem:[#allocation5 + $0xb0] sm:$0xff]  ;;  %v1602_v9 = vld [vmem:[#allocation5 + $0x68] sm:$0xff]  ;;  %s1188_s22 = scalar_lea.hbm %s2176_s9, %s1586_s13  ;;  %s383_s11 = scalar_lea.vmem [#allocation8], %s1291_s29 }
  0x3a   : > { %821 = vmatpush.bf16.msra.mxu2 %v1612_v2  ;;  %v1620_v6 = vld [vmem:[#allocation5 + $0xf8] sm:$0xff]  ;;  %v1619_v7 = vld [vmem:[#allocation5 + $0xf0] sm:$0xff]  ;;  %v1610_v10 = vld [vmem:[#allocation5 + $0xa8] sm:$0xff]  ;;  %s1190_s28 = sshll.u32 %s383_s11, 4  ;;  %s1178_s1 = scalar_lea.sflag [#allocation4], %s2049_s18  ;;  %s1191_s28 = int_to_ptr.vmem [resolvable:$true] %s1190_s28 }
  0x3b   : > { %834 = vmatpush.bf16.msra.mxu3 %v1620_v6  ;;  %v1618_v11 = vld [vmem:[#allocation5 + $0xe8] sm:$0xff]  ;;  %v1593_v12 = vld [vmem:[#allocation5 + $0x20] sm:$0xff]  ;;  %v1592_v16 = vld [vmem:[#allocation5 + $0x18] sm:$0xff]  ;;  %s1849_s15 = scalar_lea.hbm %s2176_s9, 16 }
  0x3c   : > { %796 = vmatpush.bf16.msra.mxu0 %v1595_v3  ;;  %v1601_v13 = vld [vmem:[#allocation5 + $0x60] sm:$0xff]  ;;  %v1600_v17 = vld [vmem:[#allocation5 + $0x58] sm:$0xff]  ;;  %v1591_v20 = vld [vmem:[#allocation5 + $0x10] sm:$0xff] }
  0x3d   : > { %809 = vmatpush.bf16.msra.mxu1 %v1603_v4  ;;  %v1609_v14 = vld [vmem:[#allocation5 + $0xa0] sm:$0xff]  ;;  %v1608_v18 = vld [vmem:[#allocation5 + $0x98] sm:$0xff]  ;;  %v1599_v21 = vld [vmem:[#allocation5 + $0x50] sm:$0xff] }
  0x3e   : > { %822 = vmatpush.bf16.msra.mxu2 %v1611_v5  ;;  %v1617_v15 = vld [vmem:[#allocation5 + $0xe0] sm:$0xff]  ;;  %v1616_v19 = vld [vmem:[#allocation5 + $0xd8] sm:$0xff]  ;;  %v1607_v22 = vld [vmem:[#allocation5 + $0x90] sm:$0xff] }
  0x3f   : > { %835 = vmatpush.bf16.msra.mxu3 %v1619_v7  ;;  %v1615_v23 = vld [vmem:[#allocation5 + $0xd0] sm:$0xff]  ;;  %v1590_v24 = vld [vmem:[#allocation5 + $0x8] sm:$0xff]  ;;  %v1589_v27 = vld [vmem:[#allocation5] sm:$0xff] }
  0x40   : > { %797 = vmatpush.bf16.msra.mxu0 %v1594_v8  ;;  %v1598_v25 = vld [vmem:[#allocation5 + $0x48] sm:$0xff]  ;;  %v1597_v29 = vld [vmem:[#allocation5 + $0x40] sm:$0xff]  ;;  %v386_v31 = vld [vmem:[%s2053_s21 + $0x8] sm:$0xff] }
  0x41   : > { %810 = vmatpush.bf16.msra.mxu1 %v1602_v9  ;;  %v1606_v26 = vld [vmem:[#allocation5 + $0x88] sm:$0xff]  ;;  %v1628_v32 = vld [vmem:[#allocation5 + $0x138] sm:$0xff]  ;;  %v1605_v34 = vld [vmem:[#allocation5 + $0x80] sm:$0xff]  ;;  %v393_v37 = vpack.c.bf16 %v386_v31, %v386_v31 }
  0x42   : > { %823 = vmatpush.bf16.msra.mxu2 %v1610_v10  ;;  %v1614_v28 = vld [vmem:[#allocation5 + $0xc8] sm:$0xff]  ;;  %v1636_v33 = vld [vmem:[#allocation5 + $0x178] sm:$0xff]  ;;  %v1613_v38 = vld [vmem:[#allocation5 + $0xc0] sm:$0xff] }
  0x43   : > { %836 = vmatpush.bf16.msra.mxu3 %v1618_v11  ;;  %v385_v30 = vld [vmem:[%s2053_s21] sm:$0xff]  ;;  %v387_v35 = vld [vmem:[%s2053_s21 + $0x10] sm:$0xff]  ;;  %v388_v39 = vld [vmem:[%s2053_s21 + $0x18] sm:$0xff] }
  0x44   : > { %798 = vmatpush.bf16.msra.mxu0 %v1593_v12  ;;  %v392_v36 = vpack.c.bf16 %v385_v30, %v385_v30  ;;  %v1637_v40 = vld [vmem:[#allocation5 + $0x180] sm:$0xff]  ;;  %v1627_v41 = vld [vmem:[#allocation5 + $0x130] sm:$0xff]  ;;  %v394_v43 = vpack.c.bf16 %v387_v35, %v387_v35  ;;  %v395_v44 = vpack.c.bf16 %v388_v39, %v388_v39  ;;  %v1626_v45 = vld [vmem:[#allocation5 + $0x128] sm:$0xff] }
  0x45   : > { %811 = vmatpush.bf16.msra.mxu1 %v1601_v13  ;;  %v1635_v42 = vld [vmem:[#allocation5 + $0x170] sm:$0xff]  ;;  %v1634_v46 = vld [vmem:[#allocation5 + $0x168] sm:$0xff]  ;;  %v1625_v47 = vld [vmem:[#allocation5 + $0x120] sm:$0xff] }
  0x46   : > { %824 = vmatpush.bf16.msra.mxu2 %v1609_v14  ;;  %v1633_v48 = vld [vmem:[#allocation5 + $0x160] sm:$0xff]  ;;  %v1624_v49 = vld [vmem:[#allocation5 + $0x118] sm:$0xff]  ;;  %v1623_v52 = vld [vmem:[#allocation5 + $0x110] sm:$0xff] }
  0x47   : > { %837 = vmatpush.bf16.msra.mxu3 %v1617_v15  ;;  %v1632_v50 = vld [vmem:[#allocation5 + $0x158] sm:$0xff]  ;;  %v1631_v53 = vld [vmem:[#allocation5 + $0x150] sm:$0xff]  ;;  %v1622_v55 = vld [vmem:[#allocation5 + $0x108] sm:$0xff] }
  0x48   : > { %799 = vmatpush.bf16.msra.mxu0 %v1592_v16  ;;  %v391_v51 = vld [vmem:[%s2053_s21 + $0x30] sm:$0xff]  ;;  %v1630_v56 = vld [vmem:[#allocation5 + $0x148] sm:$0xff]  ;;  %v390_v60 = vld [vmem:[%s2053_s21 + $0x28] sm:$0xff] }
  0x49   : > { %812 = vmatpush.bf16.msra.mxu1 %v1600_v17  ;;  %v398_v54 = vpack.c.bf16 %v391_v51, %v391_v51  ;;  %v1621_v57 = vld [vmem:[#allocation5 + $0x100] sm:$0xff]  ;;  %v389_v59 = vld [vmem:[%s2053_s21 + $0x20] sm:$0xff]  ;;  %v397_v62 = vpack.c.bf16 %v390_v60, %v390_v60  ;;  %v1643_v1 = vld [vmem:[%s2170_s3 + $0x28] sm:$0xff]  ;;  %s1192_s21 = sshll.u32 %s1188_s22, 4  ;;  %s1193_s21 = int_to_ptr.hbm [resolvable:$true] %s1192_s21 }
  0x4a   : > { %825 = vmatpush.bf16.msra.mxu2 %v1608_v18  ;;  %v1629_v58 = vld [vmem:[#allocation5 + $0x140] sm:$0xff]  ;;  %v396_v61 = vpack.c.bf16 %v389_v59, %v389_v59  ;;  %v1645_v63 = vld [vmem:[%s2170_s3 + $0x38] sm:$0xff]  ;;  %v1642_v2 = vld [vmem:[%s2170_s3 + $0x20] sm:$0xff]  ;;  %s1843_s5 = sshra.s32 %s1193_s21, 4  ;;  %s1844_s5 = int_to_ptr.hbm [resolvable:$true] %s1843_s5 }
  0x4b   : > { %838 = vmatpush.bf16.msra.mxu3 %v1616_v19  ;;  %v1644_v0 = vld [vmem:[%s2170_s3 + $0x30] sm:$0xff]  ;;  %v1641_v3 = vld [vmem:[%s2170_s3 + $0x18] sm:$0xff]  ;;  %v1639_v7 = vld [vmem:[%s2170_s3 + $0x8] sm:$0xff]  ;;  %s1845_s17 = scalar_lea.hbm %s1844_s5, 8  ;;  %p1850_p12 = scmp.lt.s32.totalorder %s1844_s5, %s2176_s9 }
  0x4c   : > { %800 = vmatpush.bf16.msra.mxu0 %v1591_v20  ;;  %v1640_v6 = vld [vmem:[%s2170_s3 + $0x10] sm:$0xff]  ;;  %v1638_v8 = vld [vmem:[%s2170_s3] sm:$0xff]  ;;  %v1652_v14 = vld [vmem:[#allocation7 + $0x30] sm:$0xff]  ;;  %p1846_p1 = scmp.ne.s32.totalorder %s1844_s5, %s1845_s17  ;;  %p1851_p7 = scmp.lt.s32.totalorder %s1849_s15, %s1845_s17 }
  0x4d   : > { %813 = vmatpush.bf16.msra.mxu1 %v1599_v21  ;;  %v1653_v13 = vld [vmem:[#allocation7 + $0x38] sm:$0xff]  ;;  %v1651_v18 = vld [vmem:[#allocation7 + $0x28] sm:$0xff] }
  0x4e   : > { %826 = vmatpush.bf16.msra.mxu2 %v1607_v22  ;;  %v887_v19 = vld [vmem:[%s2169_s2] sm:$0x1]  ;;  %v1650_v22 = vld [vmem:[#allocation7 + $0x20] sm:$0xff]  ;;  %p1847_p3 = pnand %p1846_p1, %p2020_p4  ;;  %p1852_p8 = por %p1851_p7, %p1850_p12 }
  0x4f   : > { %839 = vmatpush.bf16.msra.mxu3 %v1615_v23  ;;  %v888_v21 = vpack.c.bf16 %v887_v19, %v887_v19 }
  0x50   : > { %801 = vmatpush.bf16.msra.mxu0 %v1590_v24  ;;  %p1848_p5 = pneg %p1847_p3 }
  0x51   : > { %814 = vmatpush.bf16.msra.mxu1 %v1598_v25  ;;  %v890_v25 = vpack.i.b16 %v888_v21, %v888_v21 }
  0x52   : > { %827 = vmatpush.bf16.msra.mxu2 %v1606_v26  ;;  %v1649_v26 = vld [vmem:[#allocation7 + $0x18] sm:$0xff]  ;;  %p1853_p9 = pnand %p1852_p8, %p1848_p5 }
  0x53   : > { %840 = vmatpush.bf16.msra.mxu3 %v1614_v28  ;;  %v892_v31 = vperm.slane %v890_v25, 0 }
  0x54   : > { %802 = vmatpush.bf16.msra.mxu0 %v1589_v27 }
  0x55   : > { %815 = vmatpush.bf16.msra.mxu1 %v1597_v29  ;;  %v894_v35 = vunpack.c.l.bf16 %v892_v31 }
  0x56   : > { %828 = vmatpush.bf16.msra.mxu2 %v1605_v34 }
  0x57   : > { %803 = vmatmul.bf16.vlgmr.msra.gmra.mxu0 %v392_v36  ;;  %841 = vmatpush.bf16.msra.mxu3 %v1613_v38 }
  0x58   : > { %847 = vmatpush.bf16.msrb.mxu0 %v1628_v32  ;;  %816 = vmatmul.bf16.vlgmr.msra.gmra.mxu1 %v393_v37 }
  0x59   : > { %860 = vmatpush.bf16.msrb.mxu1 %v1636_v33  ;;  %829 = vmatmul.bf16.vlgmr.msra.gmra.mxu2 %v394_v43  ;;  %v1647_v43 = vld [vmem:[#allocation7 + $0x8] sm:$0xff] }
  0x5a   : > { %880 = vmatpush.bf16.msrb.mxu2 %v1637_v40  ;;  %842 = vmatmul.bf16.vlgmr.msra.gmra.mxu3 %v395_v44  ;;  %v1646_v44 = vld [vmem:[#allocation7] sm:$0xff] }
  0x5b   : > { %964 = vmatpush.bf16.msrb.mxu3 %v1645_v63  ;;  %v1655_v63 = vld [vmem:[%s2174_s7 + $0x8] sm:$0xff] }
  0x5c   : > { %848 = vmatpush.bf16.msrb.mxu0 %v1627_v41 }
  0x5d   : > { %861 = vmatpush.bf16.msrb.mxu1 %v1635_v42  ;;  %v1648_v42 = vld [vmem:[#allocation7 + $0x10] sm:$0xff] }
  0x5e   : > { %1055 = vmatpush.bf16.msra.mxu2 %v1653_v13  ;;  %v1734_v13 = vld [vmem:[%s2175_s8] ss:$0 sm:$0xff] }
  0x5f   : > { %965 = vmatpush.bf16.msrb.mxu3 %v1644_v0  ;;  %v1654_v0 = vld [vmem:[%s2174_s7] sm:$0xff] }
  0x60   : > { %849 = vmatpush.bf16.msrb.mxu0 %v1626_v45  ;;  %v1661_v45 = vld [vmem:[%s2174_s7 + $0x38] sm:$0xff] }
  0x61   : > { %862 = vmatpush.bf16.msrb.mxu1 %v1634_v46  ;;  %v1660_v46 = vld [vmem:[%s2174_s7 + $0x30] sm:$0xff] }
  0x62   : > { %1056 = vmatpush.bf16.msra.mxu2 %v1652_v14 }
  0x63   : > { %966 = vmatpush.bf16.msrb.mxu3 %v1643_v1  ;;  %v1069_v1 = vld [vmem:[%s2173_s6] sm:$0x1] }
  0x64   : > { %850 = vmatpush.bf16.msrb.mxu0 %v1625_v47  ;;  %v1659_v47 = vld [vmem:[%s2174_s7 + $0x28] sm:$0xff] }
  0x65   : > { %863 = vmatpush.bf16.msrb.mxu1 %v1633_v48  ;;  %v978_v48 = vld [vmem:[%s2171_s4] sm:$0x1] }
  0x66   : > { %1057 = vmatpush.bf16.msra.mxu2 %v1651_v18 }
  0x67   : > { %967 = vmatpush.bf16.msrb.mxu3 %v1642_v2  ;;  %v1070_v2 = vpack.c.bf16 %v1069_v1, %v1069_v1 }
  0x68   : > { %851 = vmatpush.bf16.msrb.mxu0 %v1624_v49  ;;  %v979_v49 = vpack.c.bf16 %v978_v48, %v978_v48 }
  0x69   : > { %864 = vmatpush.bf16.msrb.mxu1 %v1632_v50  ;;  %1488 = vmatmul.msk.bf16.vlgmr.msrb.gmra.mxu2 %vm791_vm0, %v398_v54  ;;  %v1658_v50 = vld [vmem:[%s2174_s7 + $0x20] sm:$0xff] }
  0x6a   : > { %1058 = vmatpush.bf16.msra.mxu2 %v1650_v22  ;;  %v981_v51 = vpack.i.b16 %v979_v49, %v979_v49 }
  0x6b   : > { %968 = vmatpush.bf16.msrb.mxu3 %v1641_v3  ;;  %v1072_v3 = vpack.i.b16 %v1070_v2, %v1070_v2 }
  0x6c   : > { %852 = vmatpush.bf16.msrb.mxu0 %v1623_v52  ;;  %v1657_v52 = vld [vmem:[%s2174_s7 + $0x18] sm:$0xff] }
  0x6d   : > { %865 = vmatpush.bf16.msrb.mxu1 %v1631_v53  ;;  %v983_v53 = vperm.slane %v981_v51, 0 }
  0x6e   : > { %1059 = vmatpush.bf16.msra.mxu2 %v1649_v26 }
  0x6f   : > { %969 = vmatpush.bf16.msrb.mxu3 %v1640_v6 }
  0x70   : > { %853 = vmatpush.bf16.msrb.mxu0 %v1622_v55 }
  0x71   : > { %866 = vmatpush.bf16.msrb.mxu1 %v1630_v56  ;;  %v985_v56 = vunpack.c.l.bf16 %v983_v53 }
  0x72   : > { %1060 = vmatpush.bf16.msra.mxu2 %v1648_v42 }
  0x73   : > { %970 = vmatpush.bf16.msrb.mxu3 %v1639_v7 }
  0x74   : > { %854 = vmatpush.bf16.msrb.mxu0 %v1621_v57 }
  0x75   : > { %867 = vmatpush.bf16.msrb.mxu1 %v1629_v58 }
  0x76   : > { %1061 = vmatpush.bf16.msra.mxu2 %v1647_v43 }
  0x77   : > { %855 = vmatmul.bf16.vlgmr.msrb.gmra.mxu0 %v396_v61  ;;  %971 = vmatpush.bf16.msrb.mxu3 %v1638_v8 }
  0x78   : > { %868 = vmatmul.bf16.vlgmr.msrb.gmra.mxu1 %v397_v62  ;;  %1150 = vmatpush.bf16.msra.mxu0 %v1661_v45  ;;  %v1656_v62 = vld [vmem:[%s2174_s7 + $0x10] sm:$0xff] }
  0x7a   : > { %1062 = vmatpush.bf16.msra.mxu2 %v1646_v44 }
  0x7c   : > { %1151 = vmatpush.bf16.msra.mxu0 %v1660_v46 }
  0x80   : > { %1152 = vmatpush.bf16.msra.mxu0 %v1659_v47 }
  0x84   : > { %1153 = vmatpush.bf16.msra.mxu0 %v1658_v50 }
  0x88   : > { %1154 = vmatpush.bf16.msra.mxu0 %v1657_v52 }
  0x8c   : > { %1155 = vmatpush.bf16.msra.mxu0 %v1656_v62 }
  0x90   : > { %1156 = vmatpush.bf16.msra.mxu0 %v1655_v63 }
  0x94   : > { %1157 = vmatpush.bf16.msra.mxu0 %v1654_v0 }
  0xd4   : > { %v804_v4 = vpop.f32.mrf.mxu0 }
  0xd5   : > { %v817_v5 = vpop.f32.mrf.mxu1 }
  0xd6   : > { %v818_v17 = vadd.f32 %v817_v5, %v804_v4  ;;  %v1074_v4 = vperm.slane %v1072_v3, 0 }
  0xd8   : > { %v1076_v7 = vunpack.c.l.bf16 %v1074_v4 }
  0xdc   : > { %v806_v9 = vpop.f32.mrf.mxu0  ;;  %v830_v11 = vpop.f32.mrf.mxu2 }
  0xdd   : > { %v819_v10 = vpop.f32.mrf.mxu1  ;;  %v843_v12 = vpop.f32.mrf.mxu3  ;;  %v831_v20 = vadd.f32 %v830_v11, %v818_v17 }
  0xdf   : > { %v844_v24 = vadd.f32 %v843_v12, %v831_v20 }
  0xe4   : > { %v832_v15 = vpop.f32.mrf.mxu2 }
  0xe5   : > { %v845_v16 = vpop.f32.mrf.mxu3 }
  0xec   : > { %v882_v23 = vpop.f32.mrf.mxu2 }
  0xf4   : > { %v856_v27 = vpop.f32.mrf.mxu0  ;;  %v884_v32 = vpop.f32.mrf.mxu2 }
  0xf5   : > { %v869_v28 = vpop.f32.mrf.mxu1  ;;  %v857_v29 = vadd.f32 %v856_v27, %v844_v24 }
  0xf7   : > { %v870_v30 = vadd.f32 %v869_v28, %v857_v29 }
  0xf9   : > { %v883_v33 = vadd.f32 %v882_v23, %v870_v30 }
  0xfb   : > { %v886_v34 = vpack.c.bf16 %v883_v33, %v883_v33 }
  0xfc   : > { %v858_v36 = vpop.f32.mrf.mxu0 }
  0xfd   : > { %v871_v37 = vpop.f32.mrf.mxu1  ;;  %v893_v38 = vunpack.c.l.bf16 %v886_v34 }
  0xff   : > { %v895_v39 = vadd.f32 %v894_v35, %v893_v38 }
 0x101   : > { %v898_v40 = vmax.f32 %v895_v39, 0.0 }
 0x103   : > { %v899_v41 = vpack.c.bf16 %v898_v40, %v898_v40 }
 0x105   : > { %972 = vmatmul.bf16.vlgmr.msrb.gmra.mxu3 %v899_v41 }
 0x188   : > { %v973_v54 = vpop.f32.mrf.mxu3 }
 0x189   : > { %v977_v55 = vpack.c.bf16 %v973_v54, %v973_v54 }
 0x18b   : > { %v984_v57 = vunpack.c.l.bf16 %v977_v55 }
 0x18d   : > { %v986_v58 = vadd.f32 %v985_v56, %v984_v57 }
 0x18f   : > { %v989_v59 = vmax.f32 %v986_v58, 0.0 }
 0x190   : > { %v975_v60 = vpop.f32.mrf.mxu3 }
 0x191   : > { %v990_v61 = vpack.c.bf16 %v989_v59, %v989_v59 }
 0x193   : > { %1063 = vmatmul.bf16.vlgmr.msra.gmra.mxu2 %v990_v61 }
 0x216   : > { %v1064_v5 = vpop.f32.mrf.mxu2 }
 0x217   : > { %v1068_v6 = vpack.c.bf16 %v1064_v5, %v1064_v5 }
 0x219   : > { %v1075_v8 = vunpack.c.l.bf16 %v1068_v6 }
 0x21b   : > { %v1077_v9 = vadd.f32 %v1076_v7, %v1075_v8 }
 0x21d   : > { %v1080_v10 = vmax.f32 %v1077_v9, 0.0 }
 0x21e   : > { %v1066_v11 = vpop.f32.mrf.mxu2 }
 0x21f   : > { %v1081_v12 = vpack.c.bf16 %v1080_v10, %v1080_v10 }
 0x221   : > { %1158 = vmatmul.bf16.vlgmr.msra.gmra.mxu0 %v1081_v12 }
 0x29e   : > { %v1159_v14 = vpop.f32.mrf.mxu0 }
 0x29f   : > { %v1160_v15 = vadd.f32 %v1734_v13, %v1159_v14 }
 0x2a1   : > { %v1164_v16 = vsel %vm1163_vm1, %v1160_v15, -inf }
 0x2a2   : > { %1165 = vmax.xlane.f32.xlu0 %v1164_v16 }
 0x2a6   : > { %v1161_v17 = vpop.f32.mrf.mxu0 }
 0x315   : > { %v1166_v18 = vpop.xlane.xlu0 %1165 }
 0x316   : > { %v1167_v19 = vsub.f32 %v1160_v15, %v1166_v18 }
 0x318   : > { %v1168_v20 = vmul.f32 1.442695, %v1167_v19 }
 0x31a   : > { %1735 = vpow2.f32 %v1168_v20 }
 0x320   : > { %v1736_v21 = vpop.eup %1735 }
 0x321   : > { %v1170_v22 = vsel %vm1163_vm1, %v1736_v21, 0.0 }
 0x322   : > { %1171 = vadd.xlane.f32.xlu0 %v1170_v22 }
 0x395   : > { %v1172_v23 = vpop.xlane.xlu0 %1171 }
 0x396   : > { %1737 = vlog2.f32 %v1172_v23 }
 0x39c   : > { %v1738_v24 = vpop.eup %1737 }
 0x39d   : > { %v1174_v25 = vmul.f32 0.6931472, %v1738_v24 }
 0x39f   : > { %v1175_v26 = vsub.f32 %v1167_v19, %v1174_v25 }
 0x3a1   : > { %1176 = vst.msk [vmem:[%s383_s11] sm:$0xff] %vm1163_vm1, %v1175_v26 }
 0x3a2   : > { %1856 = shalt.err (!%p1853_p9)
}
 0x3a3   : > { %1675 = dma.vmem_to_hbm [thread:$0]  (%p2020_p4), %s1191_s28, 128, %s1193_s21, %s1178_s1  }
 0x3a4 PF: > { %s1204_s18 = sand.u32 1, %s1887_s30   ;;  %p2192_p10 = scmp.ge.s32.totalorder %s1899_s12, 2 }
 0x3a5   : > { %s1205_s27 = scalar_lea.sflag [#allocation4], %s1204_s18 }
 0x3a6   : > { %p1689_p11 = pnand %p2192_p10, %p2024_p6 }
 0x3a8   : > { %p1690_p13 = pneg %p1689_p11 }
 0x3aa   : > { %1882 = dma.done.wait (%p1690_p13), %s1205_s27, 128  }
 0x3ab   : > { %1884 = vsyncadd (%p1690_p13), %s1205_s27, 4294967168  ;;  %s2193_s12 = sld [smem:[#allocation13_spill]]  ;;  %s2196_s30 = smov %s1891_s10 }
 0x3ac   : > { %s2194_s29 = sld [smem:[#allocation12_spill]] }
 0x3ad   : > { %s2195_s11 = sld [smem:[#allocation14_spill]] }
 0x3b1   : > { %p23_p0 = scmp.ge.s32.totalorder %s2193_s12, 4  }
 0x3b2   : > { %s2197_s10 = smov %s2194_s29 }
 0x3b3   :  { %25 = sbr.rel (!%p23_p0) target bundleno = 9 (0x9), region = 109 }
 0x3b8   :  { %1211 = vsyncpa [#allocation3], 1 }
 0x3b9   :  { %1213 = vsyncpa [#allocation3 + $0x1], 1 }
 0x3ba   :  { %1214 = vsyncpa [#allocation6], 1 }
 0x3bb   :  { %1215 = vsyncpa [#allocation4], 1 }
 0x3bc   :  { %1217 = vsyncpa [#allocation4 + $0x1], 1 }

</bundles_post_ra>
